<compile_context>
chip_gen: v7x
topology: tpu7x:2x2x1
jax: 0.10.0
libtpu: 0.0.40
codegen_flags: <defaults>
</compile_context>

<pallas_src>
import functools

import jax
import jax.numpy as jnp
from jax import lax
from jax.experimental import pallas as pl
from jax.experimental.pallas import tpu as pltpu

_LANES = 128


def _dwconv_kernel(x_ref, w_ref, b_ref, o_ref, *, H, W, C_T, unroll):
    # x_ref: (H, W, C_T) unpadded input tile (batch dim squeezed by BlockSpec)
    # w_ref: (3, 3, C_T) per-channel 3x3 filters
    # b_ref: (1, C_T)    per-channel bias
    # o_ref: (H, W, C_T) output tile
    f32 = jnp.float32

    # Hoisted once per grid step: per-tap weights, bias row, W-edge masks.
    w_tap = [[w_ref[ky, kx, :].reshape(1, C_T) for kx in range(3)]
             for ky in range(3)]                                     # native dtype
    bias_row = jnp.broadcast_to(b_ref[0, :].astype(f32).reshape(1, C_T), (W, C_T))

    wi = lax.broadcasted_iota(jnp.int32, (W, C_T), 0)
    not_first_col = wi > 0          # dx = -1 tap valid (x-1 >= 0)
    not_last_col = wi < (W - 1)     # dx = +1 tap valid (x+1 <  W)
    zero_row = jnp.zeros((W, C_T), x_ref.dtype)

    def shifted(row):
        # Shift so position x holds in[x-1] / in[x+1]; circular wrap zero-masked.
        row_l = jnp.where(not_first_col, pltpu.roll(row, shift=1, axis=0), zero_row)
        row_r = jnp.where(not_last_col, pltpu.roll(row, shift=W - 1, axis=0), zero_row)
        return (row_l, row, row_r)

    def acc_taps(acc, trip, ky):
        rl, rc, rr = trip
        acc = acc + rl * w_tap[ky][0]   # in[x-1] * w[ky,0]
        acc = acc + rc * w_tap[ky][1]   # in[x  ] * w[ky,1]
        acc = acc + rr * w_tap[ky][2]   # in[x+1] * w[ky,2]
        return acc

    if H == 1:
        # Degenerate case: both vertical halo rows are zero.
        o_ref[0] = acc_taps(bias_row, shifted(x_ref[0]), 1).astype(o_ref.dtype)
        return

    # ---- peeled top edge row (y = 0): in[-1] is zero ----
    trip0 = shifted(x_ref[0])
    trip1 = shifted(x_ref[1])
    o_ref[0] = acc_taps(acc_taps(bias_row, trip0, 1), trip1, 2).astype(o_ref.dtype)

    # ---- interior rows: rolling 3-row window (one new row load/shift per row) ----
    def row_body(y, carry):
        trip_prev, trip_cur = carry
        trip_next = shifted(x_ref[y + 1])
        acc = bias_row
        acc = acc_taps(acc, trip_prev, 0)
        acc = acc_taps(acc, trip_cur, 1)
        acc = acc_taps(acc, trip_next, 2)
        o_ref[y] = acc.astype(o_ref.dtype)
        return (trip_cur, trip_next)

    trip_prev, trip_cur = lax.fori_loop(1, H - 1, row_body, (trip0, trip1),
                                        unroll=unroll)

    # ---- peeled bottom edge row (y = H-1): in[H] is zero ----
    o_ref[H - 1] = acc_taps(acc_taps(bias_row, trip_prev, 0),
                            trip_cur, 1).astype(o_ref.dtype)


def dwconv_pallas(x, weight, bias, H, W):
    """x: (B, N, C) with N == H*W; weight: (C, 1, 3, 3) (PyTorch layout); bias: (C,)."""
    B, N, C = x.shape
    assert N == H * W

    # ---- glue: (B, N, C) -> NHWC view (no transpose, no pad) ----
    x_nhwc = x.reshape(B, H, W, C)
    w_hwc = jnp.transpose(weight[:, 0, :, :], (1, 2, 0))            # (3, 3, C)
    b_2d = bias.reshape(1, C)

    itemsize = jnp.dtype(x.dtype).itemsize

    # Generation-aware VMEM budget (128 MiB on v5e/v6e, 64 MiB per TC on v7x).
    try:
        vmem_cap = int(pltpu.get_tpu_info().vmem_capacity_bytes)
    except Exception:
        vmem_cap = 64 * 1024 * 1024
    vmem_limit = int(min(vmem_cap // 2, 64 * 1024 * 1024))
    budget = int(vmem_limit * 0.7)   # headroom for double-buffers + scratch

    # Channel tile: cap at 256 (vreg pressure); prefer >= 4 grid steps so the
    # BlockSpec software pipeline overlaps DMA with compute even at B == 1.
    if C % _LANES == 0:
        cands = [c for c in (256, 128)
                 if C % c == 0 and 5 * H * W * c * itemsize <= budget]
        if not cands:
            cands = [_LANES]
        C_TILE = cands[-1]                      # smallest (max steps) as fallback
        for c in cands:                         # largest first
            if B * (C // c) >= 4:
                C_TILE = c
                break
        n_ct = C // C_TILE
    else:
        # Block last dim == full array dim is legal; masked lane stores are far
        # cheaper than wrapper-side pad + slice HBM passes.
        C_TILE = C
        n_ct = 1

    unroll = True if (H - 2) <= 8 else 4
    kernel = functools.partial(_dwconv_kernel, H=H, W=W, C_T=C_TILE, unroll=unroll)

    cost = pl.CostEstimate(
        flops=int(18 * B * H * W * C),
        transcendentals=0,
        bytes_accessed=int(2 * B * H * W * C * itemsize),
    )

    out_nhwc = pl.pallas_call(
        kernel,
        out_shape=jax.ShapeDtypeStruct((B, H, W, C), x.dtype),
        grid=(B, n_ct),
        in_specs=[
            pl.BlockSpec((None, H, W, C_TILE), lambda b, c: (b, 0, 0, c)),
            pl.BlockSpec((3, 3, C_TILE), lambda b, c: (0, 0, c)),
            pl.BlockSpec((1, C_TILE), lambda b, c: (0, c)),
        ],
        out_specs=pl.BlockSpec((None, H, W, C_TILE), lambda b, c: (b, 0, 0, c)),
        compiler_params=pltpu.CompilerParams(
            dimension_semantics=("parallel", "parallel"),
            vmem_limit_bytes=vmem_limit,
        ),
        cost_estimate=cost,
    )(x_nhwc, w_hwc, b_2d)

    # ---- glue: NHWC -> (B, N, C) (matches x.flatten(2).transpose(1, 2)) ----
    return out_nhwc.reshape(B, N, C)


def dwconv_reference(x, weight, bias, H, W):
    """Pure-JAX reference matching PyTorch nn.Conv2d(groups=C) exactly."""
    B, N, C = x.shape
    x_nchw = jnp.transpose(x, (0, 2, 1)).reshape(B, C, H, W)
    y = lax.conv_general_dilated(
        x_nchw, weight,
        window_strides=(1, 1), padding=((1, 1), (1, 1)),
        dimension_numbers=("NCHW", "OIHW", "NCHW"),
        feature_group_count=C,
    )
    y = y + bias[None, :, None, None]
    return jnp.transpose(y.reshape(B, C, H * W), (0, 2, 1))


if __name__ == "__main__":
    def run_case(B, C, H, W, key, dtype=jnp.float32, tol=1e-5):
        N = H * W
        kx, kw, kb = jax.random.split(key, 3)
        x = jax.random.normal(kx, (B, N, C), dtype=jnp.float32)
        fan_in = 1 * 3 * 3
        bound = 1.0 / (fan_in ** 0.5)
        weight = jax.random.uniform(kw, (C, 1, 3, 3), jnp.float32, -bound, bound)
        bias = jax.random.uniform(kb, (C,), jnp.float32, -bound, bound)

        out = jax.block_until_ready(
            dwconv_pallas(x.astype(dtype), weight.astype(dtype),
                          bias.astype(dtype), H, W))
        ref = dwconv_reference(x, weight, bias, H, W)
        assert out.shape == (B, N, C)
        err = float(jnp.max(jnp.abs(out.astype(jnp.float32) - ref)))
        assert err < tol, f"max abs err {err} (B={B},C={C},H={H},W={W},{dtype})"

    key = jax.random.PRNGKey(0)
    k1, k2, k3, k4 = jax.random.split(key, 4)
    run_case(2, 32, 8, 8, k1)                                   # C<128: full-C block, masked lanes
    run_case(1, 768, 8, 8, k2)                                  # model dim: 6 channel tiles at B=1
    run_case(1, 128, 24, 24, k3)                                # larger H: unrolled interior loop
    run_case(1, 256, 16, 16, k4, dtype=jnp.bfloat16, tol=1e-1)  # bf16 path (looser tolerance)

    print("KERNEL_OK")
</pallas_src>

<mosaic_0001>
module attributes {stable_mosaic.version = 11 : i64} {
  func.func @_dwconv_kernel(%arg0: i32, %arg1: i32, %arg2: memref<1x8x8x32xf32, #tpu.memory_space<vmem>>, %arg3: memref<3x3x32xf32, #tpu.memory_space<vmem>>, %arg4: memref<1x32xf32, #tpu.memory_space<vmem>>, %arg5: memref<1x8x8x32xf32, #tpu.memory_space<vmem>>) attributes {dimension_semantics = [#tpu.dimension_semantics<parallel>, #tpu.dimension_semantics<parallel>], iteration_bounds = array<i64: 2, 1>, scalar_prefetch = 0 : i64, scratch_operands = 0 : i64, tpu.core_type = #tpu.core_type<tc>, window_params = [{transform_indices = @transform_0, window_bounds = array<i64: 1, 8, 8, 32>}, {transform_indices = @transform_1, window_bounds = array<i64: 3, 3, 32>}, {transform_indices = @transform_2, window_bounds = array<i64: 1, 32>}, {transform_indices = @transform_3, window_bounds = array<i64: 1, 8, 8, 32>}]} {
    %c0 = arith.constant 0 : index
    %c0_0 = arith.constant 0 : index
    %c0_1 = arith.constant 0 : index
    %0 = vector.load %arg3[%c0, %c0_0, %c0_1] : memref<3x3x32xf32, #tpu.memory_space<vmem>>, vector<1x1x32xf32>
    %1 = vector.shape_cast %0 : vector<1x1x32xf32> to vector<32xf32>
    %2 = vector.shape_cast %1 : vector<32xf32> to vector<1x32xf32>
    %c0_2 = arith.constant 0 : index
    %c1 = arith.constant 1 : index
    %c0_3 = arith.constant 0 : index
    %3 = vector.load %arg3[%c0_2, %c1, %c0_3] : memref<3x3x32xf32, #tpu.memory_space<vmem>>, vector<1x1x32xf32>
    %4 = vector.shape_cast %3 : vector<1x1x32xf32> to vector<32xf32>
    %5 = vector.shape_cast %4 : vector<32xf32> to vector<1x32xf32>
    %c0_4 = arith.constant 0 : index
    %c2 = arith.constant 2 : index
    %c0_5 = arith.constant 0 : index
    %6 = vector.load %arg3[%c0_4, %c2, %c0_5] : memref<3x3x32xf32, #tpu.memory_space<vmem>>, vector<1x1x32xf32>
    %7 = vector.shape_cast %6 : vector<1x1x32xf32> to vector<32xf32>
    %8 = vector.shape_cast %7 : vector<32xf32> to vector<1x32xf32>
    %c1_6 = arith.constant 1 : index
    %c0_7 = arith.constant 0 : index
    %c0_8 = arith.constant 0 : index
    %9 = vector.load %arg3[%c1_6, %c0_7, %c0_8] : memref<3x3x32xf32, #tpu.memory_space<vmem>>, vector<1x1x32xf32>
    %10 = vector.shape_cast %9 : vector<1x1x32xf32> to vector<32xf32>
    %11 = vector.shape_cast %10 : vector<32xf32> to vector<1x32xf32>
    %c1_9 = arith.constant 1 : index
    %c1_10 = arith.constant 1 : index
    %c0_11 = arith.constant 0 : index
    %12 = vector.load %arg3[%c1_9, %c1_10, %c0_11] : memref<3x3x32xf32, #tpu.memory_space<vmem>>, vector<1x1x32xf32>
    %13 = vector.shape_cast %12 : vector<1x1x32xf32> to vector<32xf32>
    %14 = vector.shape_cast %13 : vector<32xf32> to vector<1x32xf32>
    %c1_12 = arith.constant 1 : index
    %c2_13 = arith.constant 2 : index
    %c0_14 = arith.constant 0 : index
    %15 = vector.load %arg3[%c1_12, %c2_13, %c0_14] : memref<3x3x32xf32, #tpu.memory_space<vmem>>, vector<1x1x32xf32>
    %16 = vector.shape_cast %15 : vector<1x1x32xf32> to vector<32xf32>
    %17 = vector.shape_cast %16 : vector<32xf32> to vector<1x32xf32>
    %c2_15 = arith.constant 2 : index
    %c0_16 = arith.constant 0 : index
    %c0_17 = arith.constant 0 : index
    %18 = vector.load %arg3[%c2_15, %c0_16, %c0_17] : memref<3x3x32xf32, #tpu.memory_space<vmem>>, vector<1x1x32xf32>
    %19 = vector.shape_cast %18 : vector<1x1x32xf32> to vector<32xf32>
    %20 = vector.shape_cast %19 : vector<32xf32> to vector<1x32xf32>
    %c2_18 = arith.constant 2 : index
    %c1_19 = arith.constant 1 : index
    %c0_20 = arith.constant 0 : index
    %21 = vector.load %arg3[%c2_18, %c1_19, %c0_20] : memref<3x3x32xf32, #tpu.memory_space<vmem>>, vector<1x1x32xf32>
    %22 = vector.shape_cast %21 : vector<1x1x32xf32> to vector<32xf32>
    %23 = vector.shape_cast %22 : vector<32xf32> to vector<1x32xf32>
    %c2_21 = arith.constant 2 : index
    %c2_22 = arith.constant 2 : index
    %c0_23 = arith.constant 0 : index
    %24 = vector.load %arg3[%c2_21, %c2_22, %c0_23] : memref<3x3x32xf32, #tpu.memory_space<vmem>>, vector<1x1x32xf32>
    %25 = vector.shape_cast %24 : vector<1x1x32xf32> to vector<32xf32>
    %26 = vector.shape_cast %25 : vector<32xf32> to vector<1x32xf32>
    %c0_24 = arith.constant 0 : index
    %c0_25 = arith.constant 0 : index
    %27 = vector.load %arg4[%c0_24, %c0_25] : memref<1x32xf32, #tpu.memory_space<vmem>>, vector<1x32xf32>
    %28 = vector.shape_cast %27 : vector<1x32xf32> to vector<32xf32>
    %29 = vector.shape_cast %28 : vector<32xf32> to vector<1x32xf32>
    %30 = vector.shape_cast %29 : vector<1x32xf32> to vector<1x32xf32>
    %31 = vector.broadcast %30 : vector<1x32xf32> to vector<8x32xf32>
    %32 = tpu.iota {dimensions = array<i32: 0>} : vector<8x32xi32>
    %c0_i32 = arith.constant 0 : i32
    %33 = vector.broadcast %c0_i32 : i32 to vector<8x32xi32>
    %34 = arith.cmpi sgt, %32, %33 : vector<8x32xi32>
    %c7_i32 = arith.constant 7 : i32
    %35 = vector.broadcast %c7_i32 : i32 to vector<8x32xi32>
    %36 = arith.cmpi slt, %32, %35 : vector<8x32xi32>
    %cst = arith.constant 0.000000e+00 : f32
    %37 = vector.broadcast %cst : f32 to vector<8x32xf32>
    %c0_26 = arith.constant 0 : index
    %c0_27 = arith.constant 0 : index
    %c0_28 = arith.constant 0 : index
    %c0_29 = arith.constant 0 : index
    %38 = vector.load %arg2[%c0_26, %c0_27, %c0_28, %c0_29] : memref<1x8x8x32xf32, #tpu.memory_space<vmem>>, vector<1x1x8x32xf32>
    %39 = vector.shape_cast %38 : vector<1x1x8x32xf32> to vector<8x32xf32>
    %c1_i32 = arith.constant 1 : i32
    %40 = tpu.dynamic_rotate %39 by %c1_i32 dim 0 : vector<8x32xf32>, i32 -> vector<8x32xf32>
    %41 = arith.select %34, %40, %37 : vector<8x32xi1>, vector<8x32xf32>
    %c7_i32_30 = arith.constant 7 : i32
    %42 = tpu.dynamic_rotate %39 by %c7_i32_30 dim 0 : vector<8x32xf32>, i32 -> vector<8x32xf32>
    %43 = arith.select %36, %42, %37 : vector<8x32xi1>, vector<8x32xf32>
    %c0_31 = arith.constant 0 : index
    %c1_32 = arith.constant 1 : index
    %c0_33 = arith.constant 0 : index
    %c0_34 = arith.constant 0 : index
    %44 = vector.load %arg2[%c0_31, %c1_32, %c0_33, %c0_34] : memref<1x8x8x32xf32, #tpu.memory_space<vmem>>, vector<1x1x8x32xf32>
    %45 = vector.shape_cast %44 : vector<1x1x8x32xf32> to vector<8x32xf32>
    %c1_i32_35 = arith.constant 1 : i32
    %46 = tpu.dynamic_rotate %45 by %c1_i32_35 dim 0 : vector<8x32xf32>, i32 -> vector<8x32xf32>
    %47 = arith.select %34, %46, %37 : vector<8x32xi1>, vector<8x32xf32>
    %c7_i32_36 = arith.constant 7 : i32
    %48 = tpu.dynamic_rotate %45 by %c7_i32_36 dim 0 : vector<8x32xf32>, i32 -> vector<8x32xf32>
    %49 = arith.select %36, %48, %37 : vector<8x32xi1>, vector<8x32xf32>
    %50 = vector.broadcast %11 : vector<1x32xf32> to vector<8x32xf32>
    %51 = arith.mulf %41, %50 : vector<8x32xf32>
    %52 = arith.addf %31, %51 : vector<8x32xf32>
    %53 = vector.broadcast %14 : vector<1x32xf32> to vector<8x32xf32>
    %54 = arith.mulf %39, %53 : vector<8x32xf32>
    %55 = arith.addf %52, %54 : vector<8x32xf32>
    %56 = vector.broadcast %17 : vector<1x32xf32> to vector<8x32xf32>
    %57 = arith.mulf %43, %56 : vector<8x32xf32>
    %58 = arith.addf %55, %57 : vector<8x32xf32>
    %59 = vector.broadcast %20 : vector<1x32xf32> to vector<8x32xf32>
    %60 = arith.mulf %47, %59 : vector<8x32xf32>
    %61 = arith.addf %58, %60 : vector<8x32xf32>
    %62 = vector.broadcast %23 : vector<1x32xf32> to vector<8x32xf32>
    %63 = arith.mulf %45, %62 : vector<8x32xf32>
    %64 = arith.addf %61, %63 : vector<8x32xf32>
    %65 = vector.broadcast %26 : vector<1x32xf32> to vector<8x32xf32>
    %66 = arith.mulf %49, %65 : vector<8x32xf32>
    %67 = arith.addf %64, %66 : vector<8x32xf32>
    %c0_37 = arith.constant 0 : index
    %c0_38 = arith.constant 0 : index
    %c0_39 = arith.constant 0 : index
    %c0_40 = arith.constant 0 : index
    %68 = vector.load %arg5[%c0_37, %c0_38, %c0_39, %c0_40] : memref<1x8x8x32xf32, #tpu.memory_space<vmem>>, vector<1x1x8x32xf32>
    %69 = vector.shape_cast %68 : vector<1x1x8x32xf32> to vector<8x32xf32>
    %70 = vector.shape_cast %67 : vector<8x32xf32> to vector<1x1x8x32xf32>
    tpu.vector_store %arg5[%c0_37, %c0_38, %c0_39, %c0_40], %70 {strides = array<i32>} : memref<1x8x8x32xf32, #tpu.memory_space<vmem>>, vector<1x1x8x32xf32>,
    %c1_i32_41 = arith.constant 1 : i32
    %c1_i32_42 = arith.constant 1 : i32
    %71 = arith.addi %c1_i32_41, %c1_i32_42 : i32
    %c0_43 = arith.constant 0 : index
    %72 = arith.index_cast %71 : i32 to index
    %c0_44 = arith.constant 0 : index
    %c0_45 = arith.constant 0 : index
    %73 = vector.load %arg2[%c0_43, %72, %c0_44, %c0_45] : memref<1x8x8x32xf32, #tpu.memory_space<vmem>>, vector<1x1x8x32xf32>
    %74 = vector.shape_cast %73 : vector<1x1x8x32xf32> to vector<8x32xf32>
    %c1_i32_46 = arith.constant 1 : i32
    %75 = tpu.dynamic_rotate %74 by %c1_i32_46 dim 0 : vector<8x32xf32>, i32 -> vector<8x32xf32>
    %76 = arith.select %34, %75, %37 : vector<8x32xi1>, vector<8x32xf32>
    %c7_i32_47 = arith.constant 7 : i32
    %77 = tpu.dynamic_rotate %74 by %c7_i32_47 dim 0 : vector<8x32xf32>, i32 -> vector<8x32xf32>
    %78 = arith.select %36, %77, %37 : vector<8x32xi1>, vector<8x32xf32>
    %79 = vector.broadcast %2 : vector<1x32xf32> to vector<8x32xf32>
    %80 = arith.mulf %41, %79 : vector<8x32xf32>
    %81 = arith.addf %31, %80 : vector<8x32xf32>
    %82 = vector.broadcast %5 : vector<1x32xf32> to vector<8x32xf32>
    %83 = arith.mulf %39, %82 : vector<8x32xf32>
    %84 = arith.addf %81, %83 : vector<8x32xf32>
    %85 = vector.broadcast %8 : vector<1x32xf32> to vector<8x32xf32>
    %86 = arith.mulf %43, %85 : vector<8x32xf32>
    %87 = arith.addf %84, %86 : vector<8x32xf32>
    %88 = vector.broadcast %11 : vector<1x32xf32> to vector<8x32xf32>
    %89 = arith.mulf %47, %88 : vector<8x32xf32>
    %90 = arith.addf %87, %89 : vector<8x32xf32>
    %91 = vector.broadcast %14 : vector<1x32xf32> to vector<8x32xf32>
    %92 = arith.mulf %45, %91 : vector<8x32xf32>
    %93 = arith.addf %90, %92 : vector<8x32xf32>
    %94 = vector.broadcast %17 : vector<1x32xf32> to vector<8x32xf32>
    %95 = arith.mulf %49, %94 : vector<8x32xf32>
    %96 = arith.addf %93, %95 : vector<8x32xf32>
    %97 = vector.broadcast %20 : vector<1x32xf32> to vector<8x32xf32>
    %98 = arith.mulf %76, %97 : vector<8x32xf32>
    %99 = arith.addf %96, %98 : vector<8x32xf32>
    %100 = vector.broadcast %23 : vector<1x32xf32> to vector<8x32xf32>
    %101 = arith.mulf %74, %100 : vector<8x32xf32>
    %102 = arith.addf %99, %101 : vector<8x32xf32>
    %103 = vector.broadcast %26 : vector<1x32xf32> to vector<8x32xf32>
    %104 = arith.mulf %78, %103 : vector<8x32xf32>
    %105 = arith.addf %102, %104 : vector<8x32xf32>
    %c0_48 = arith.constant 0 : index
    %106 = arith.index_cast %c1_i32_41 : i32 to index
    %c0_49 = arith.constant 0 : index
    %c0_50 = arith.constant 0 : index
    %107 = vector.load %arg5[%c0_48, %106, %c0_49, %c0_50] : memref<1x8x8x32xf32, #tpu.memory_space<vmem>>, vector<1x1x8x32xf32>
    %108 = vector.shape_cast %107 : vector<1x1x8x32xf32> to vector<8x32xf32>
    %109 = vector.shape_cast %105 : vector<8x32xf32> to vector<1x1x8x32xf32>
    tpu.vector_store %arg5[%c0_48, %106, %c0_49, %c0_50], %109 {strides = array<i32>} : memref<1x8x8x32xf32, #tpu.memory_space<vmem>>, vector<1x1x8x32xf32>,
    %c2_i32 = arith.constant 2 : i32
    %c1_i32_51 = arith.constant 1 : i32
    %110 = arith.addi %c2_i32, %c1_i32_51 : i32
    %c0_52 = arith.constant 0 : index
    %111 = arith.index_cast %110 : i32 to index
    %c0_53 = arith.constant 0 : index
    %c0_54 = arith.constant 0 : index
    %112 = vector.load %arg2[%c0_52, %111, %c0_53, %c0_54] : memref<1x8x8x32xf32, #tpu.memory_space<vmem>>, vector<1x1x8x32xf32>
    %113 = vector.shape_cast %112 : vector<1x1x8x32xf32> to vector<8x32xf32>
    %c1_i32_55 = arith.constant 1 : i32
    %114 = tpu.dynamic_rotate %113 by %c1_i32_55 dim 0 : vector<8x32xf32>, i32 -> vector<8x32xf32>
    %115 = arith.select %34, %114, %37 : vector<8x32xi1>, vector<8x32xf32>
    %c7_i32_56 = arith.constant 7 : i32
    %116 = tpu.dynamic_rotate %113 by %c7_i32_56 dim 0 : vector<8x32xf32>, i32 -> vector<8x32xf32>
    %117 = arith.select %36, %116, %37 : vector<8x32xi1>, vector<8x32xf32>
    %118 = vector.broadcast %2 : vector<1x32xf32> to vector<8x32xf32>
    %119 = arith.mulf %47, %118 : vector<8x32xf32>
    %120 = arith.addf %31, %119 : vector<8x32xf32>
    %121 = vector.broadcast %5 : vector<1x32xf32> to vector<8x32xf32>
    %122 = arith.mulf %45, %121 : vector<8x32xf32>
    %123 = arith.addf %120, %122 : vector<8x32xf32>
    %124 = vector.broadcast %8 : vector<1x32xf32> to vector<8x32xf32>
    %125 = arith.mulf %49, %124 : vector<8x32xf32>
    %126 = arith.addf %123, %125 : vector<8x32xf32>
    %127 = vector.broadcast %11 : vector<1x32xf32> to vector<8x32xf32>
    %128 = arith.mulf %76, %127 : vector<8x32xf32>
    %129 = arith.addf %126, %128 : vector<8x32xf32>
    %130 = vector.broadcast %14 : vector<1x32xf32> to vector<8x32xf32>
    %131 = arith.mulf %74, %130 : vector<8x32xf32>
    %132 = arith.addf %129, %131 : vector<8x32xf32>
    %133 = vector.broadcast %17 : vector<1x32xf32> to vector<8x32xf32>
    %134 = arith.mulf %78, %133 : vector<8x32xf32>
    %135 = arith.addf %132, %134 : vector<8x32xf32>
    %136 = vector.broadcast %20 : vector<1x32xf32> to vector<8x32xf32>
    %137 = arith.mulf %115, %136 : vector<8x32xf32>
    %138 = arith.addf %135, %137 : vector<8x32xf32>
    %139 = vector.broadcast %23 : vector<1x32xf32> to vector<8x32xf32>
    %140 = arith.mulf %113, %139 : vector<8x32xf32>
    %141 = arith.addf %138, %140 : vector<8x32xf32>
    %142 = vector.broadcast %26 : vector<1x32xf32> to vector<8x32xf32>
    %143 = arith.mulf %117, %142 : vector<8x32xf32>
    %144 = arith.addf %141, %143 : vector<8x32xf32>
    %c0_57 = arith.constant 0 : index
    %145 = arith.index_cast %c2_i32 : i32 to index
    %c0_58 = arith.constant 0 : index
    %c0_59 = arith.constant 0 : index
    %146 = vector.load %arg5[%c0_57, %145, %c0_58, %c0_59] : memref<1x8x8x32xf32, #tpu.memory_space<vmem>>, vector<1x1x8x32xf32>
    %147 = vector.shape_cast %146 : vector<1x1x8x32xf32> to vector<8x32xf32>
    %148 = vector.shape_cast %144 : vector<8x32xf32> to vector<1x1x8x32xf32>
    tpu.vector_store %arg5[%c0_57, %145, %c0_58, %c0_59], %148 {strides = array<i32>} : memref<1x8x8x32xf32, #tpu.memory_space<vmem>>, vector<1x1x8x32xf32>,
    %c3_i32 = arith.constant 3 : i32
    %c1_i32_60 = arith.constant 1 : i32
    %149 = arith.addi %c3_i32, %c1_i32_60 : i32
    %c0_61 = arith.constant 0 : index
    %150 = arith.index_cast %149 : i32 to index
    %c0_62 = arith.constant 0 : index
    %c0_63 = arith.constant 0 : index
    %151 = vector.load %arg2[%c0_61, %150, %c0_62, %c0_63] : memref<1x8x8x32xf32, #tpu.memory_space<vmem>>, vector<1x1x8x32xf32>
    %152 = vector.shape_cast %151 : vector<1x1x8x32xf32> to vector<8x32xf32>
    %c1_i32_64 = arith.constant 1 : i32
    %153 = tpu.dynamic_rotate %152 by %c1_i32_64 dim 0 : vector<8x32xf32>, i32 -> vector<8x32xf32>
    %154 = arith.select %34, %153, %37 : vector<8x32xi1>, vector<8x32xf32>
    %c7_i32_65 = arith.constant 7 : i32
    %155 = tpu.dynamic_rotate %152 by %c7_i32_65 dim 0 : vector<8x32xf32>, i32 -> vector<8x32xf32>
    %156 = arith.select %36, %155, %37 : vector<8x32xi1>, vector<8x32xf32>
    %157 = vector.broadcast %2 : vector<1x32xf32> to vector<8x32xf32>
    %158 = arith.mulf %76, %157 : vector<8x32xf32>
    %159 = arith.addf %31, %158 : vector<8x32xf32>
    %160 = vector.broadcast %5 : vector<1x32xf32> to vector<8x32xf32>
    %161 = arith.mulf %74, %160 : vector<8x32xf32>
    %162 = arith.addf %159, %161 : vector<8x32xf32>
    %163 = vector.broadcast %8 : vector<1x32xf32> to vector<8x32xf32>
    %164 = arith.mulf %78, %163 : vector<8x32xf32>
    %165 = arith.addf %162, %164 : vector<8x32xf32>
    %166 = vector.broadcast %11 : vector<1x32xf32> to vector<8x32xf32>
    %167 = arith.mulf %115, %166 : vector<8x32xf32>
    %168 = arith.addf %165, %167 : vector<8x32xf32>
    %169 = vector.broadcast %14 : vector<1x32xf32> to vector<8x32xf32>
    %170 = arith.mulf %113, %169 : vector<8x32xf32>
    %171 = arith.addf %168, %170 : vector<8x32xf32>
    %172 = vector.broadcast %17 : vector<1x32xf32> to vector<8x32xf32>
    %173 = arith.mulf %117, %172 : vector<8x32xf32>
    %174 = arith.addf %171, %173 : vector<8x32xf32>
    %175 = vector.broadcast %20 : vector<1x32xf32> to vector<8x32xf32>
    %176 = arith.mulf %154, %175 : vector<8x32xf32>
    %177 = arith.addf %174, %176 : vector<8x32xf32>
    %178 = vector.broadcast %23 : vector<1x32xf32> to vector<8x32xf32>
    %179 = arith.mulf %152, %178 : vector<8x32xf32>
    %180 = arith.addf %177, %179 : vector<8x32xf32>
    %181 = vector.broadcast %26 : vector<1x32xf32> to vector<8x32xf32>
    %182 = arith.mulf %156, %181 : vector<8x32xf32>
    %183 = arith.addf %180, %182 : vector<8x32xf32>
    %c0_66 = arith.constant 0 : index
    %184 = arith.index_cast %c3_i32 : i32 to index
    %c0_67 = arith.constant 0 : index
    %c0_68 = arith.constant 0 : index
    %185 = vector.load %arg5[%c0_66, %184, %c0_67, %c0_68] : memref<1x8x8x32xf32, #tpu.memory_space<vmem>>, vector<1x1x8x32xf32>
    %186 = vector.shape_cast %185 : vector<1x1x8x32xf32> to vector<8x32xf32>
    %187 = vector.shape_cast %183 : vector<8x32xf32> to vector<1x1x8x32xf32>
    tpu.vector_store %arg5[%c0_66, %184, %c0_67, %c0_68], %187 {strides = array<i32>} : memref<1x8x8x32xf32, #tpu.memory_space<vmem>>, vector<1x1x8x32xf32>,
    %c4_i32 = arith.constant 4 : i32
    %c1_i32_69 = arith.constant 1 : i32
    %188 = arith.addi %c4_i32, %c1_i32_69 : i32
    %c0_70 = arith.constant 0 : index
    %189 = arith.index_cast %188 : i32 to index
    %c0_71 = arith.constant 0 : index
    %c0_72 = arith.constant 0 : index
    %190 = vector.load %arg2[%c0_70, %189, %c0_71, %c0_72] : memref<1x8x8x32xf32, #tpu.memory_space<vmem>>, vector<1x1x8x32xf32>
    %191 = vector.shape_cast %190 : vector<1x1x8x32xf32> to vector<8x32xf32>
    %c1_i32_73 = arith.constant 1 : i32
    %192 = tpu.dynamic_rotate %191 by %c1_i32_73 dim 0 : vector<8x32xf32>, i32 -> vector<8x32xf32>
    %193 = arith.select %34, %192, %37 : vector<8x32xi1>, vector<8x32xf32>
    %c7_i32_74 = arith.constant 7 : i32
    %194 = tpu.dynamic_rotate %191 by %c7_i32_74 dim 0 : vector<8x32xf32>, i32 -> vector<8x32xf32>
    %195 = arith.select %36, %194, %37 : vector<8x32xi1>, vector<8x32xf32>
    %196 = vector.broadcast %2 : vector<1x32xf32> to vector<8x32xf32>
    %197 = arith.mulf %115, %196 : vector<8x32xf32>
    %198 = arith.addf %31, %197 : vector<8x32xf32>
    %199 = vector.broadcast %5 : vector<1x32xf32> to vector<8x32xf32>
    %200 = arith.mulf %113, %199 : vector<8x32xf32>
    %201 = arith.addf %198, %200 : vector<8x32xf32>
    %202 = vector.broadcast %8 : vector<1x32xf32> to vector<8x32xf32>
    %203 = arith.mulf %117, %202 : vector<8x32xf32>
    %204 = arith.addf %201, %203 : vector<8x32xf32>
    %205 = vector.broadcast %11 : vector<1x32xf32> to vector<8x32xf32>
    %206 = arith.mulf %154, %205 : vector<8x32xf32>
    %207 = arith.addf %204, %206 : vector<8x32xf32>
    %208 = vector.broadcast %14 : vector<1x32xf32> to vector<8x32xf32>
    %209 = arith.mulf %152, %208 : vector<8x32xf32>
    %210 = arith.addf %207, %209 : vector<8x32xf32>
    %211 = vector.broadcast %17 : vector<1x32xf32> to vector<8x32xf32>
    %212 = arith.mulf %156, %211 : vector<8x32xf32>
    %213 = arith.addf %210, %212 : vector<8x32xf32>
    %214 = vector.broadcast %20 : vector<1x32xf32> to vector<8x32xf32>
    %215 = arith.mulf %193, %214 : vector<8x32xf32>
    %216 = arith.addf %213, %215 : vector<8x32xf32>
    %217 = vector.broadcast %23 : vector<1x32xf32> to vector<8x32xf32>
    %218 = arith.mulf %191, %217 : vector<8x32xf32>
    %219 = arith.addf %216, %218 : vector<8x32xf32>
    %220 = vector.broadcast %26 : vector<1x32xf32> to vector<8x32xf32>
    %221 = arith.mulf %195, %220 : vector<8x32xf32>
    %222 = arith.addf %219, %221 : vector<8x32xf32>
    %c0_75 = arith.constant 0 : index
    %223 = arith.index_cast %c4_i32 : i32 to index
    %c0_76 = arith.constant 0 : index
    %c0_77 = arith.constant 0 : index
    %224 = vector.load %arg5[%c0_75, %223, %c0_76, %c0_77] : memref<1x8x8x32xf32, #tpu.memory_space<vmem>>, vector<1x1x8x32xf32>
    %225 = vector.shape_cast %224 : vector<1x1x8x32xf32> to vector<8x32xf32>
    %226 = vector.shape_cast %222 : vector<8x32xf32> to vector<1x1x8x32xf32>
    tpu.vector_store %arg5[%c0_75, %223, %c0_76, %c0_77], %226 {strides = array<i32>} : memref<1x8x8x32xf32, #tpu.memory_space<vmem>>, vector<1x1x8x32xf32>,
    %c5_i32 = arith.constant 5 : i32
    %c1_i32_78 = arith.constant 1 : i32
    %227 = arith.addi %c5_i32, %c1_i32_78 : i32
    %c0_79 = arith.constant 0 : index
    %228 = arith.index_cast %227 : i32 to index
    %c0_80 = arith.constant 0 : index
    %c0_81 = arith.constant 0 : index
    %229 = vector.load %arg2[%c0_79, %228, %c0_80, %c0_81] : memref<1x8x8x32xf32, #tpu.memory_space<vmem>>, vector<1x1x8x32xf32>
    %230 = vector.shape_cast %229 : vector<1x1x8x32xf32> to vector<8x32xf32>
    %c1_i32_82 = arith.constant 1 : i32
    %231 = tpu.dynamic_rotate %230 by %c1_i32_82 dim 0 : vector<8x32xf32>, i32 -> vector<8x32xf32>
    %232 = arith.select %34, %231, %37 : vector<8x32xi1>, vector<8x32xf32>
    %c7_i32_83 = arith.constant 7 : i32
    %233 = tpu.dynamic_rotate %230 by %c7_i32_83 dim 0 : vector<8x32xf32>, i32 -> vector<8x32xf32>
    %234 = arith.select %36, %233, %37 : vector<8x32xi1>, vector<8x32xf32>
    %235 = vector.broadcast %2 : vector<1x32xf32> to vector<8x32xf32>
    %236 = arith.mulf %154, %235 : vector<8x32xf32>
    %237 = arith.addf %31, %236 : vector<8x32xf32>
    %238 = vector.broadcast %5 : vector<1x32xf32> to vector<8x32xf32>
    %239 = arith.mulf %152, %238 : vector<8x32xf32>
    %240 = arith.addf %237, %239 : vector<8x32xf32>
    %241 = vector.broadcast %8 : vector<1x32xf32> to vector<8x32xf32>
    %242 = arith.mulf %156, %241 : vector<8x32xf32>
    %243 = arith.addf %240, %242 : vector<8x32xf32>
    %244 = vector.broadcast %11 : vector<1x32xf32> to vector<8x32xf32>
    %245 = arith.mulf %193, %244 : vector<8x32xf32>
    %246 = arith.addf %243, %245 : vector<8x32xf32>
    %247 = vector.broadcast %14 : vector<1x32xf32> to vector<8x32xf32>
    %248 = arith.mulf %191, %247 : vector<8x32xf32>
    %249 = arith.addf %246, %248 : vector<8x32xf32>
    %250 = vector.broadcast %17 : vector<1x32xf32> to vector<8x32xf32>
    %251 = arith.mulf %195, %250 : vector<8x32xf32>
    %252 = arith.addf %249, %251 : vector<8x32xf32>
    %253 = vector.broadcast %20 : vector<1x32xf32> to vector<8x32xf32>
    %254 = arith.mulf %232, %253 : vector<8x32xf32>
    %255 = arith.addf %252, %254 : vector<8x32xf32>
    %256 = vector.broadcast %23 : vector<1x32xf32> to vector<8x32xf32>
    %257 = arith.mulf %230, %256 : vector<8x32xf32>
    %258 = arith.addf %255, %257 : vector<8x32xf32>
    %259 = vector.broadcast %26 : vector<1x32xf32> to vector<8x32xf32>
    %260 = arith.mulf %234, %259 : vector<8x32xf32>
    %261 = arith.addf %258, %260 : vector<8x32xf32>
    %c0_84 = arith.constant 0 : index
    %262 = arith.index_cast %c5_i32 : i32 to index
    %c0_85 = arith.constant 0 : index
    %c0_86 = arith.constant 0 : index
    %263 = vector.load %arg5[%c0_84, %262, %c0_85, %c0_86] : memref<1x8x8x32xf32, #tpu.memory_space<vmem>>, vector<1x1x8x32xf32>
    %264 = vector.shape_cast %263 : vector<1x1x8x32xf32> to vector<8x32xf32>
    %265 = vector.shape_cast %261 : vector<8x32xf32> to vector<1x1x8x32xf32>
    tpu.vector_store %arg5[%c0_84, %262, %c0_85, %c0_86], %265 {strides = array<i32>} : memref<1x8x8x32xf32, #tpu.memory_space<vmem>>, vector<1x1x8x32xf32>,
    %c6_i32 = arith.constant 6 : i32
    %c1_i32_87 = arith.constant 1 : i32
    %266 = arith.addi %c6_i32, %c1_i32_87 : i32
    %c0_88 = arith.constant 0 : index
    %267 = arith.index_cast %266 : i32 to index
    %c0_89 = arith.constant 0 : index
    %c0_90 = arith.constant 0 : index
    %268 = vector.load %arg2[%c0_88, %267, %c0_89, %c0_90] : memref<1x8x8x32xf32, #tpu.memory_space<vmem>>, vector<1x1x8x32xf32>
    %269 = vector.shape_cast %268 : vector<1x1x8x32xf32> to vector<8x32xf32>
    %c1_i32_91 = arith.constant 1 : i32
    %270 = tpu.dynamic_rotate %269 by %c1_i32_91 dim 0 : vector<8x32xf32>, i32 -> vector<8x32xf32>
    %271 = arith.select %34, %270, %37 : vector<8x32xi1>, vector<8x32xf32>
    %c7_i32_92 = arith.constant 7 : i32
    %272 = tpu.dynamic_rotate %269 by %c7_i32_92 dim 0 : vector<8x32xf32>, i32 -> vector<8x32xf32>
    %273 = arith.select %36, %272, %37 : vector<8x32xi1>, vector<8x32xf32>
    %274 = vector.broadcast %2 : vector<1x32xf32> to vector<8x32xf32>
    %275 = arith.mulf %193, %274 : vector<8x32xf32>
    %276 = arith.addf %31, %275 : vector<8x32xf32>
    %277 = vector.broadcast %5 : vector<1x32xf32> to vector<8x32xf32>
    %278 = arith.mulf %191, %277 : vector<8x32xf32>
    %279 = arith.addf %276, %278 : vector<8x32xf32>
    %280 = vector.broadcast %8 : vector<1x32xf32> to vector<8x32xf32>
    %281 = arith.mulf %195, %280 : vector<8x32xf32>
    %282 = arith.addf %279, %281 : vector<8x32xf32>
    %283 = vector.broadcast %11 : vector<1x32xf32> to vector<8x32xf32>
    %284 = arith.mulf %232, %283 : vector<8x32xf32>
    %285 = arith.addf %282, %284 : vector<8x32xf32>
    %286 = vector.broadcast %14 : vector<1x32xf32> to vector<8x32xf32>
    %287 = arith.mulf %230, %286 : vector<8x32xf32>
    %288 = arith.addf %285, %287 : vector<8x32xf32>
    %289 = vector.broadcast %17 : vector<1x32xf32> to vector<8x32xf32>
    %290 = arith.mulf %234, %289 : vector<8x32xf32>
    %291 = arith.addf %288, %290 : vector<8x32xf32>
    %292 = vector.broadcast %20 : vector<1x32xf32> to vector<8x32xf32>
    %293 = arith.mulf %271, %292 : vector<8x32xf32>
    %294 = arith.addf %291, %293 : vector<8x32xf32>
    %295 = vector.broadcast %23 : vector<1x32xf32> to vector<8x32xf32>
    %296 = arith.mulf %269, %295 : vector<8x32xf32>
    %297 = arith.addf %294, %296 : vector<8x32xf32>
    %298 = vector.broadcast %26 : vector<1x32xf32> to vector<8x32xf32>
    %299 = arith.mulf %273, %298 : vector<8x32xf32>
    %300 = arith.addf %297, %299 : vector<8x32xf32>
    %c0_93 = arith.constant 0 : index
    %301 = arith.index_cast %c6_i32 : i32 to index
    %c0_94 = arith.constant 0 : index
    %c0_95 = arith.constant 0 : index
    %302 = vector.load %arg5[%c0_93, %301, %c0_94, %c0_95] : memref<1x8x8x32xf32, #tpu.memory_space<vmem>>, vector<1x1x8x32xf32>
    %303 = vector.shape_cast %302 : vector<1x1x8x32xf32> to vector<8x32xf32>
    %304 = vector.shape_cast %300 : vector<8x32xf32> to vector<1x1x8x32xf32>
    tpu.vector_store %arg5[%c0_93, %301, %c0_94, %c0_95], %304 {strides = array<i32>} : memref<1x8x8x32xf32, #tpu.memory_space<vmem>>, vector<1x1x8x32xf32>,
    %c6_i32_96 = arith.constant 6 : i32
    %305 = vector.broadcast %2 : vector<1x32xf32> to vector<8x32xf32>
    %306 = arith.mulf %232, %305 : vector<8x32xf32>
    %307 = arith.addf %31, %306 : vector<8x32xf32>
    %308 = vector.broadcast %5 : vector<1x32xf32> to vector<8x32xf32>
    %309 = arith.mulf %230, %308 : vector<8x32xf32>
    %310 = arith.addf %307, %309 : vector<8x32xf32>
    %311 = vector.broadcast %8 : vector<1x32xf32> to vector<8x32xf32>
    %312 = arith.mulf %234, %311 : vector<8x32xf32>
    %313 = arith.addf %310, %312 : vector<8x32xf32>
    %314 = vector.broadcast %11 : vector<1x32xf32> to vector<8x32xf32>
    %315 = arith.mulf %271, %314 : vector<8x32xf32>
    %316 = arith.addf %313, %315 : vector<8x32xf32>
    %317 = vector.broadcast %14 : vector<1x32xf32> to vector<8x32xf32>
    %318 = arith.mulf %269, %317 : vector<8x32xf32>
    %319 = arith.addf %316, %318 : vector<8x32xf32>
    %320 = vector.broadcast %17 : vector<1x32xf32> to vector<8x32xf32>
    %321 = arith.mulf %273, %320 : vector<8x32xf32>
    %322 = arith.addf %319, %321 : vector<8x32xf32>
    %c0_97 = arith.constant 0 : index
    %c7 = arith.constant 7 : index
    %c0_98 = arith.constant 0 : index
    %c0_99 = arith.constant 0 : index
    %323 = vector.load %arg5[%c0_97, %c7, %c0_98, %c0_99] : memref<1x8x8x32xf32, #tpu.memory_space<vmem>>, vector<1x1x8x32xf32>
    %324 = vector.shape_cast %323 : vector<1x1x8x32xf32> to vector<8x32xf32>
    %325 = vector.shape_cast %322 : vector<8x32xf32> to vector<1x1x8x32xf32>
    tpu.vector_store %arg5[%c0_97, %c7, %c0_98, %c0_99], %325 {strides = array<i32>} : memref<1x8x8x32xf32, #tpu.memory_space<vmem>>, vector<1x1x8x32xf32>,
    return
  }
  func.func @transform_0(%arg0: i32, %arg1: i32) -> (i32, i32, i32, i32) {
    %c0_i32 = arith.constant 0 : i32
    %c0_i32_0 = arith.constant 0 : i32
    %c0_i32_1 = arith.constant 0 : i32
    return %arg0, %c0_i32, %c0_i32_0, %arg1 : i32, i32, i32, i32
  }
  func.func @transform_1(%arg0: i32, %arg1: i32) -> (i32, i32, i32) {
    %c0_i32 = arith.constant 0 : i32
    %c0_i32_0 = arith.constant 0 : i32
    %c0_i32_1 = arith.constant 0 : i32
    return %c0_i32, %c0_i32_0, %arg1 : i32, i32, i32
  }
  func.func @transform_2(%arg0: i32, %arg1: i32) -> (i32, i32) {
    %c0_i32 = arith.constant 0 : i32
    %c0_i32_0 = arith.constant 0 : i32
    return %c0_i32, %arg1 : i32, i32
  }
  func.func @transform_3(%arg0: i32, %arg1: i32) -> (i32, i32, i32, i32) {
    %c0_i32 = arith.constant 0 : i32
    %c0_i32_0 = arith.constant 0 : i32
    %c0_i32_1 = arith.constant 0 : i32
    return %arg0, %c0_i32, %c0_i32_0, %arg1 : i32, i32, i32, i32
  }
}

</mosaic_0001>

<bundles_post_ra>
// kernel: tpu_custom_call.1
= control target key start
LH: loop header
LB: loop body
LE: loop exit
PB: predicated region body
PF: predicated region fallthrough
CT: control target
= control target key end

     0   :  { %8 = vsyncpa [#allocation3], 0  ;;  %s1302_s0 = inlined_call_operand.hbm [shape: f32[2,8,8,32], index: 0, kind: input, shape index: {}]   ;;  %s1303_s1 = inlined_call_operand.hbm [shape: f32[3,3,32], index: 1, kind: input, shape index: {}]   ;;  %s1304_s2 = inlined_call_operand.vmem [shape: f32[1,32], index: 2, kind: input, shape index: {}]   ;;  %s1305_s3 = inlined_call_operand.hbm [shape: f32[2,8,8,32], index: 3, kind: output, shape index: {}]  }
   0x1   :  { %10 = vsyncpa [#allocation3 + $0x1], 0 }
   0x2   :  { %11 = vsyncpa [#allocation6], 0 }
   0x3   :  { %12 = vsyncpa [#allocation4], 0 }
   0x4   :  { %14 = vsyncpa [#allocation4 + $0x1], 0  ;;  %s917_s12 = smov 0   ;;  %s919_s13 = smov 0  }
   0x5   :  { %s921_s14 = smov 0   ;;  %s923_s15 = smov 0  }
   0x6   :  { %s925_s16 = smov 0   ;;  %s927_s17 = smov 0  }
   0x7 LB: > { %s619_s18 = sadd.s32 4294967295, %s886_s17   ;;  %s620_s19 = sadd.s32 4294967294, %s886_s17   ;;  %s886_s17 = sphi %s927_s17, %s20_s17   ;;  %s882_s16 = sphi %s925_s16, %s1329_s16   ;;  %s878_s15 = sphi %s923_s15, %s1328_s15   ;;  %s874_s14 = sphi %s921_s14, %s1327_s14   ;;  %s870_s13 = sphi %s919_s13, %s1326_s13   ;;  %s866_s12 = sphi %s917_s12, %s1325_s12  }
   0x8   : > { %p54_p0 = scmp.ne.s32.totalorder %s870_s13, %s866_s12  ;;  %p951_p1 = scmp.eq.s32.totalorder %s619_s18, 0 }
   0x9   : > { %p955_p2 = scmp.eq.s32.totalorder %s619_s18, 1  ;;  %p138_p3 = scmp.eq.s32.totalorder %s620_s19, 1 }
   0xa   : > { %s1310_s20 = scalar_select %p951_p1, 1, 0 }
   0xb   : > { %s1311_s21 = scalar_select %p955_p2, 1, 0 }
   0xc   : > { %p961_p4 = por %p951_p1, %p54_p0  ;;  %p621_p5 = scmp.ge.s32.totalorder %s886_s17, 1 }
   0xd   : > { %p966_p6 = por %p138_p3, %p54_p0  ;;  %p145_p7 = scmp.lt.s32.totalorder %s886_s17, 3 }
   0xe   : > { %s1312_s22 = scalar_select %p961_p4, 1, 0 }
   0xf   : > { %s1313_s23 = scalar_select %p966_p6, 1, 0 }
  0x10   : > { %p971_p8 = pnand %p621_p5, %p145_p7  ;;  %s888_s25 = smov [#allocation5]  }
  0x11   : > { %s159_s26 = sshll.u32 %s888_s25, 4  ;;  %s32_s28 = sadd.s32 1, %s882_s16  ;;  %s160_s26 = int_to_ptr.vmem [resolvable:$true] %s159_s26 }
  0x12   : > { %s1314_s24 = scalar_select %p971_p8, 1, 0 }
  0x13   : > { %p671_p9 = pneg %p971_p8  ;;  %s742_s4 = scalar_lea.hbm %s1303_s1, 192 }
  0x14   : > { %p743_p12 = scmp.ne.s32.totalorder %s1303_s1, %s742_s4  ;;  %p749_p5 = scmp.lt.u32.totalorder %s742_s4, %s1303_s1 }
  0x15   : > { %p980_p11 = pnand %p671_p9, %p951_p1 }
  0x17   : > { %p744_p13 = pneg %p980_p11 }
  0x19   : > { %p745_p0 = pnand %p744_p13, %p743_p12 }
  0x1b   : > { %p746_p3 = pneg %p745_p0 }
  0x1d   : > { %p751_p7 = pnand %p749_p5, %p746_p3 }
  0x1f   : > { %754 = shalt.err (!%p751_p7)
}
  0x20   : > { %s755_s9 = scalar_lea.vmem %s160_s26, 192  ;;  %p763_p1 = scmp.lt.s32.totalorder %s160_s26, %s160_s26 }
  0x21   : > { %p756_p9 = scmp.ne.s32.totalorder %s160_s26, %s755_s9  ;;  %p764_p4 = scmp.lt.s32.totalorder %s755_s9, %s755_s9 }
  0x23   : > { %p758_p10 = pnand %p756_p9, %p744_p13  ;;  %p765_p8 = por %p764_p4, %p763_p1 }
  0x25   : > { %p759_p6 = pneg %p758_p10 }
  0x27   : > { %p766_p2 = pnand %p765_p8, %p759_p6 }
  0x29   : > { %769 = shalt.err (!%p766_p2)
}
  0x2a   : > { %s889_s10 = smov 64   ;;  %s890_s11 = smov 4  }
  0x2b   : > { %674 = dma.hbm_to_vmem [thread:$0]  (!%p980_p11), %s1303_s1, 192, %s160_s26, [#allocation6], %s889_s10, %s889_s10, %s890_s11  }
  0x2c   : > { %p34_p1 = scmp.ge.s32.totalorder %s32_s28, 2  ;;  %s41_s25 = sadd.s32 1, %s874_s14 }
  0x2d   : > { %p48_p2 = scmp.ne.s32.totalorder %s874_s14, %s870_s13  ;;  %p49_p4 = scmp.eq.s32.totalorder %s886_s17, 0 }
  0x2e   : > { %s1331_s28 = smov (%p34_p1, %s32_s28), 0  ;;  %p1317_p8 = scmp.ne.s32.totalorder %s1311_s21, 0 }
  0x2f   : > { %p1007_p6 = por %p49_p4, %p48_p2  ;;  %s36_s27 = ssub.s32 %s882_s16, %s1331_s28 }
  0x30   : > { %p1013_p10 = por %p1317_p8, %p48_p2  ;;  %p684_p12 = scmp.lt.s32.totalorder %s886_s17, 2 }
  0x31   : > { %p39_p11 = scmp.eq.s32.totalorder %s36_s27, 0  ;;  %s179_s26 = sand.u32 1, %s874_s14  }
  0x32   : > { %s625_s4 = sshll.u32 %s179_s26, 6  ;;  %s661_s6 = sshll.u32 %s882_s16, 10 }
  0x33   : > { %s1022_s5 = scalar_select %p39_p11, %s874_s14, %s41_s25  }
  0x34   : > { %s1028_s9 = scalar_lea.hbm %s1302_s0, %s661_s6  ;;  %s183_s21 = scalar_lea.vmem [#allocation2], %s625_s4 }
  0x35   : > { %s191_s10 = sshll.u32 %s183_s21, 4  ;;  %p1034_p13 = pnand %p684_p12, %p1007_p6  ;;  %s1030_s10 = int_to_ptr.vmem [resolvable:$true] %s191_s10 }
  0x36   : > { %s1038_s18 = scalar_lea.sflag [#allocation3], %s179_s26  ;;  %s770_s19 = scalar_lea.hbm %s1028_s9, 1024 }
  0x37   : > { %p771_p0 = scmp.ne.s32.totalorder %s1028_s9, %s770_s19  ;;  %p772_p3 = pneg %p1034_p13 }
  0x38   : > { %s775_s29 = scalar_lea.hbm %s1302_s0, 2048  ;;  %p776_p9 = scmp.lt.u32.totalorder %s1028_s9, %s1302_s0 }
  0x39   : > { %p773_p5 = pnand %p772_p3, %p771_p0  ;;  %p777_p1 = scmp.lt.u32.totalorder %s775_s29, %s770_s19 }
  0x3a   : > { %p779_p4 = scmp.lt.u32.totalorder %s770_s19, %s1028_s9 }
  0x3b   : > { %p774_p7 = pneg %p773_p5  ;;  %p778_p2 = por %p777_p1, %p776_p9 }
  0x3d   : > { %p780_p6 = por %p779_p4, %p778_p2 }
  0x3f   : > { %p781_p8 = pnand %p780_p6, %p774_p7 }
  0x41   : > { %784 = shalt.err (!%p781_p8)
}
  0x42   : > { %s785_s26 = scalar_lea.vmem %s1030_s10, 1024  ;;  %s891_s7 = smov [#allocation2]  }
  0x43   : > { %p786_p12 = scmp.ne.s32.totalorder %s1030_s10, %s785_s26  ;;  %s790_s8 = sshll.u32 %s891_s7, 4  ;;  %s791_s8 = int_to_ptr.vmem [resolvable:$false] %s790_s8 }
  0x44   : > { %s792_s21 = scalar_lea.vmem %s791_s8, 2048  ;;  %p793_p5 = scmp.lt.s32.totalorder %s1030_s10, %s791_s8 }
  0x45   : > { %p788_p11 = pnand %p786_p12, %p772_p3  ;;  %p794_p9 = scmp.lt.s32.totalorder %s792_s21, %s785_s26 }
  0x47   : > { %p789_p0 = pneg %p788_p11  ;;  %p795_p1 = por %p794_p9, %p793_p5 }
  0x49   : > { %p796_p2 = pnand %p795_p1, %p789_p0 }
  0x4b   : > { %799 = shalt.err (!%p796_p2)
}
  0x4c   : > { %s892_s19 = smov 128   ;;  %s893_s25 = smov 8  }
  0x4d   : > { %678 = dma.hbm_to_vmem [thread:$0]  (!%p1034_p13), %s1028_s9, 1024, %s1030_s10, %s1038_s18, %s892_s19, %s892_s19, %s893_s25  }
  0x4e   : > { %p1320_p3 = scmp.ne.s32.totalorder %s1314_s24, 0 }
  0x4f   : > { %s1069_s27 = sand.u32 (!%p1320_p3), 1, %s870_s13   ;;  %p1321_p7 = scmp.ne.s32.totalorder (!%p1320_p3), %s1312_s22, 0 }
  0x50   : > { %203 = sbr.rel (%p1320_p3) target bundleno = 157 (0x9d), region = 32  ;;  %s629_s29 = sshll.u32 (!%p1320_p3), %s1069_s27, 6 }
  0x51   : > { %s206_s4 = scalar_lea.sflag (!%p1320_p3), [#allocation3], %s1069_s27  ;;  %s1075_s6 = scalar_lea.vmem (!%p1320_p3), [#allocation2], %s629_s29 }
  0x57   : > { %853 = dma.done.wait (%p1321_p7), %s206_s4, 1024  }
  0x58   : > { %855 = vsyncadd (%p1321_p7), %s206_s4, 4294966272  ;;  %p1322_p13 = scmp.ne.s32.totalorder %s1310_s20, 0 }
  0x5a   : > { %857 = dma.done.wait (%p1322_p13), [#allocation6], 192  }
  0x5b   : > { %859 = vsyncadd (%p1322_p13), [#allocation6], 4294967104  ;;  %v260_v0 = vlaneseq  ;;  %v1087_v2 = vld [vmem:[#allocation5 + $0x1] ss:$0 sm:$0xff]  ;;  %v1089_v3 = vld [vmem:[#allocation5 + $0x5] ss:$0 sm:$0xff] }
  0x5c   : > { %v1091_v4 = vld [vmem:[#allocation5 + $0x4] ss:$0 sm:$0xff]  ;;  %v1093_v5 = vld [vmem:[#allocation5 + $0x6] ss:$0 sm:$0xff]  ;;  %v1095_v6 = vld [vmem:[#allocation5 + $0x8] ss:$0 sm:$0xff] }
  0x5d   : > { %v1085_v1 = vshrl.u32 %v260_v0, 7  ;;  %v1097_v7 = vld [vmem:[#allocation5 + $0x9] ss:$0 sm:$0xff]  ;;  %v1099_v8 = vld [vmem:[#allocation5 + $0xa] ss:$0 sm:$0xff]  ;;  %v264_v9 = vld [vmem:[%s1075_s6] sm:$0xff] }
  0x5e   : > { %v633_v10 = vld [vmem:[%s1075_s6 + $0x8] sm:$0xff]  ;;  %v265_v11 = vrot.slane %v264_v9, 7  ;;  %v267_v12 = vrot.slane %v264_v9, 1  ;;  %v640_v15 = vld [vmem:[%s1075_s6 + $0x10] sm:$0xff]  ;;  %v1106_v16 = vld [vmem:[#allocation5] ss:$0 sm:$0xff]  ;;  %v285_v18 = vmul.f32 %v1089_v3, %v264_v9  ;;  %v329_v41 = vmul.f32 %v1087_v2, %v264_v9 }
  0x5f   : > { %vm262_vm0 = vcmp.gt.s32.totalorder %v1085_v1, 0  ;;  %vm263_vm1 = vcmp.lt.s32.totalorder %v1085_v1, 7  ;;  %v271_v13 = vrot.slane %v633_v10, 7  ;;  %v273_v14 = vrot.slane %v633_v10, 1  ;;  %v1108_v17 = vld [vmem:[#allocation5 + $0x2] ss:$0 sm:$0xff] }
  0x60   : > { %v303_v19 = vmul.f32 %v1097_v7, %v633_v10  ;;  %v359_v20 = vmul.f32 %v1087_v2, %v633_v10  ;;  %v315_v21 = vrot.slane %v640_v15, 7  ;;  %v266_v22 = vsel %vm262_vm0, %v265_v11, 0.0  ;;  %v1124_v26 = vld [vmem:[%s1304_s2] ss:$0 sm:$0xff]  ;;  %v645_v51 = vld [vmem:[%s1075_s6 + $0x18] sm:$0xff]  ;;  %s1171_s24 = scalar_lea.vmem [#allocation7], %s629_s29 }
  0x61   : > { %v268_v23 = vsel %vm263_vm1, %v267_v12, 0.0  ;;  %v272_v24 = vsel %vm262_vm0, %v271_v13, 0.0  ;;  %v274_v25 = vsel %vm263_vm1, %v273_v14, 0.0  ;;  %v279_v27 = vmul.f32 %v1091_v4, %v266_v22  ;;  %s510_s9 = sshll.u32 %s1171_s24, 4  ;;  %s662_s10 = sshll.u32 %s878_s15, 10  ;;  %s1244_s9 = int_to_ptr.vmem [resolvable:$true] %s510_s9 }
  0x62   : > { %v291_v28 = vmul.f32 %v1093_v5, %v268_v23  ;;  %v297_v29 = vmul.f32 %v1095_v6, %v272_v24  ;;  %v309_v30 = vmul.f32 %v1099_v8, %v274_v25  ;;  %v323_v31 = vmul.f32 %v1106_v16, %v266_v22  ;;  %s1249_s26 = scalar_lea.hbm %s1305_s3, %s662_s10  ;;  %s496_s7 = scalar_lea.sflag [#allocation4], %s1069_s27 }
  0x63   : > { %v335_v32 = vmul.f32 %v1108_v17, %v268_v23  ;;  %v337_v33 = vmul.f32 %v1091_v4, %v272_v24  ;;  %v341_v34 = vmul.f32 %v1093_v5, %v274_v25  ;;  %v280_v35 = vadd.f32 %v1124_v26, %v279_v27  ;;  %s800_s8 = scalar_lea.vmem %s1244_s9, 1024  ;;  %s894_s15 = smov [#allocation7]  }
  0x64   : > { %v357_v36 = vmul.f32 %v1106_v16, %v272_v24  ;;  %v361_v37 = vmul.f32 %v1108_v17, %v274_v25  ;;  %v316_v38 = vsel %vm262_vm0, %v315_v21, 0.0  ;;  %vm311_vm2 = vcmask 261120   ;;  %v647_v24 = vld [vmem:[%s1075_s6 + $0x20] sm:$0xff]  ;;  %p801_p4 = scmp.ne.s32.totalorder %s1244_s9, %s800_s8  ;;  %s804_s21 = sshll.u32 %s894_s15, 4  ;;  %s805_s21 = int_to_ptr.vmem [resolvable:$false] %s804_s21 }
  0x65   : > { %v317_v39 = vrot.slane %v640_v15, 1  ;;  %v324_v40 = vadd.f32 %v1124_v26, %v323_v31  ;;  %v339_v42 = vmul.f32 %v1089_v3, %v633_v10  ;;  %v286_v43 = vadd.f32 %v285_v18, %v280_v35  ;;  %s806_s19 = scalar_lea.vmem %s805_s21, 2048  ;;  %p807_p12 = scmp.lt.s32.totalorder %s1244_s9, %s805_s21 }
  0x66   : > { %v358_v44 = vadd.f32 %v1124_v26, %v357_v36  ;;  %v343_v45 = vmul.f32 %v1095_v6, %v316_v38  ;;  %v345_v46 = vmul.f32 %v640_v15, %v1097_v7  ;;  %v363_v49 = vmul.f32 %v1091_v4, %v316_v38  ;;  %p802_p6 = pnand %p801_p4, %p1013_p10  ;;  %p808_p11 = scmp.lt.s32.totalorder %s806_s19, %s800_s8 }
  0x67   : > { %v318_v47 = vsel %vm263_vm1, %v317_v39, 0.0  ;;  %v330_v48 = vadd.f32 %v329_v41, %v324_v40  ;;  %v383_v50 = vmul.f32 %v1106_v16, %v316_v38  ;;  %v292_v52 = vadd.f32 %v291_v28, %v286_v43 }
  0x68   : > { %v360_v53 = vadd.f32 %v359_v20, %v358_v44  ;;  %v347_v54 = vmul.f32 %v1099_v8, %v318_v47  ;;  %v367_v55 = vmul.f32 %v1093_v5, %v318_v47  ;;  %v385_v58 = vmul.f32 %v1087_v2, %v640_v15  ;;  %p803_p8 = pneg %p802_p6  ;;  %p809_p0 = por %p808_p11, %p807_p12 }
  0x69   : > { %v336_v56 = vadd.f32 %v335_v32, %v330_v48  ;;  %v384_v57 = vadd.f32 %v1124_v26, %v383_v50  ;;  %v387_v59 = vmul.f32 %v1108_v17, %v318_v47  ;;  %v298_v60 = vadd.f32 %v297_v29, %v292_v52 }
  0x6a   : > { %v362_v61 = vadd.f32 %v361_v37, %v360_v53  ;;  %v353_v62 = vrot.slane %v645_v51, 7  ;;  %v355_v63 = vrot.slane %v645_v51, 1  ;;  %v365_v10 = vmul.f32 %v640_v15, %v1089_v3  ;;  %p810_p5 = pnand %p809_p0, %p803_p8 }
  0x6b   : > { %v338_v0 = vadd.f32 %v337_v33, %v336_v56  ;;  %v386_v9 = vadd.f32 %v385_v58, %v384_v57  ;;  %v371_v11 = vmul.f32 %v645_v51, %v1097_v7  ;;  %v304_v12 = vadd.f32 %v303_v19, %v298_v60 }
  0x6c   : > { %v354_v13 = vsel %vm262_vm0, %v353_v62, 0.0  ;;  %v356_v14 = vsel %vm263_vm1, %v355_v63, 0.0  ;;  %v364_v18 = vadd.f32 %v363_v49, %v362_v61  ;;  %v411_v31 = vmul.f32 %v645_v51, %v1087_v2  ;;  %v649_v49 = vld [vmem:[%s1075_s6 + $0x28] sm:$0xff] }
  0x6d   : > { %v340_v20 = vadd.f32 %v339_v42, %v338_v0  ;;  %v388_v21 = vadd.f32 %v387_v59, %v386_v9  ;;  %v369_v22 = vmul.f32 %v1095_v6, %v354_v13  ;;  %v373_v23 = vmul.f32 %v1099_v8, %v356_v14 }
  0x6e   : > { %v310_v25 = vadd.f32 %v309_v30, %v304_v12  ;;  %v366_v15 = vadd.f32 %v365_v10, %v364_v18  ;;  %v389_v27 = vmul.f32 %v1091_v4, %v354_v13  ;;  %v393_v19 = vmul.f32 %v1093_v5, %v356_v14 }
  0x6f   : > { %v342_v28 = vadd.f32 %v341_v34, %v340_v20  ;;  %v409_v29 = vmul.f32 %v1106_v16, %v354_v13  ;;  %v413_v32 = vmul.f32 %v1108_v17, %v356_v14  ;;  %v379_v30 = vrot.slane %v647_v24, 7  ;;  %v651_v20 = vld [vmem:[%s1075_s6 + $0x30] sm:$0xff] }
  0x70   : > { %312 = vst.msk [vmem:[%s1171_s24] sm:$0xff] %vm311_vm2, %v310_v25  ;;  %v368_v33 = vadd.f32 %v367_v55, %v366_v15  ;;  %v381_v35 = vrot.slane %v647_v24, 1  ;;  %v390_v36 = vadd.f32 %v389_v27, %v388_v21  ;;  %v391_v38 = vmul.f32 %v645_v51, %v1089_v3  ;;  %v653_v25 = vld [vmem:[%s1075_s6 + $0x38] sm:$0xff] }
  0x71   : > { %v344_v37 = vadd.f32 %v343_v45, %v342_v28  ;;  %v410_v34 = vadd.f32 %v1124_v26, %v409_v29  ;;  %v397_v39 = vmul.f32 %v647_v24, %v1097_v7  ;;  %v380_v41 = vsel %vm262_vm0, %v379_v30, 0.0 }
  0x72   : > { %v370_v40 = vadd.f32 %v369_v22, %v368_v33  ;;  %v382_v42 = vsel %vm263_vm1, %v381_v35, 0.0  ;;  %v437_v43 = vmul.f32 %v647_v24, %v1087_v2  ;;  %v392_v48 = vadd.f32 %v391_v38, %v390_v36 }
  0x73   : > { %v346_v44 = vadd.f32 %v345_v46, %v344_v37  ;;  %v412_v47 = vadd.f32 %v411_v31, %v410_v34  ;;  %v395_v45 = vmul.f32 %v1095_v6, %v380_v41  ;;  %v399_v51 = vmul.f32 %v1099_v8, %v382_v42 }
  0x74   : > { %v372_v50 = vadd.f32 %v371_v11, %v370_v40  ;;  %v415_v52 = vmul.f32 %v1091_v4, %v380_v41  ;;  %v419_v53 = vmul.f32 %v1093_v5, %v382_v42  ;;  %v394_v57 = vadd.f32 %v393_v19, %v392_v48 }
  0x75   : > { %v348_v55 = vadd.f32 %v347_v54, %v346_v44  ;;  %v414_v56 = vadd.f32 %v413_v32, %v412_v47  ;;  %v435_v58 = vmul.f32 %v1106_v16, %v380_v41  ;;  %v439_v59 = vmul.f32 %v1108_v17, %v382_v42 }
  0x76   : > { %v374_v46 = vadd.f32 %v373_v23, %v372_v50  ;;  %v405_v60 = vrot.slane %v649_v49, 7  ;;  %v407_v61 = vrot.slane %v649_v49, 1  ;;  %v396_v62 = vadd.f32 %v395_v45, %v394_v57 }
  0x77   : > { %644 = vst.msk [vmem:[%s1171_s24 + $0x8] sm:$0xff] %vm311_vm2, %v348_v55  ;;  %v436_v63 = vadd.f32 %v1124_v26, %v435_v58  ;;  %v416_v0 = vadd.f32 %v415_v52, %v414_v56  ;;  %v417_v9 = vmul.f32 %v647_v24, %v1089_v3  ;;  %v423_v11 = vmul.f32 %v649_v49, %v1097_v7 }
  0x78   : > { %646 = vst.msk [vmem:[%s1171_s24 + $0x10] sm:$0xff] %vm311_vm2, %v374_v46  ;;  %v406_v54 = vsel %vm262_vm0, %v405_v60, 0.0  ;;  %v408_v10 = vsel %vm263_vm1, %v407_v61, 0.0  ;;  %v398_v12 = vadd.f32 %v397_v39, %v396_v62  ;;  %v463_v24 = vmul.f32 %v649_v49, %v1087_v2 }
  0x79   : > { %v438_v13 = vadd.f32 %v437_v43, %v436_v63  ;;  %v418_v14 = vadd.f32 %v417_v9, %v416_v0  ;;  %v421_v18 = vmul.f32 %v1095_v6, %v406_v54  ;;  %v425_v21 = vmul.f32 %v1099_v8, %v408_v10 }
  0x7a   : > { %v441_v22 = vmul.f32 %v1091_v4, %v406_v54  ;;  %v461_v23 = vmul.f32 %v1106_v16, %v406_v54  ;;  %v400_v15 = vadd.f32 %v399_v51, %v398_v12  ;;  %v465_v28 = vmul.f32 %v1108_v17, %v408_v10 }
  0x7b   : > { %v440_v27 = vadd.f32 %v439_v59, %v438_v13  ;;  %v420_v19 = vadd.f32 %v419_v53, %v418_v14  ;;  %v431_v31 = vrot.slane %v651_v20, 7  ;;  %v433_v32 = vrot.slane %v651_v20, 1 }
  0x7c   : > { %v462_v29 = vadd.f32 %v1124_v26, %v461_v23  ;;  %v443_v33 = vmul.f32 %v649_v49, %v1089_v3  ;;  %648 = vst.msk [vmem:[%s1171_s24 + $0x18] sm:$0xff] %vm311_vm2, %v400_v15  ;;  %v445_v35 = vmul.f32 %v1093_v5, %v408_v10  ;;  %v457_v37 = vrot.slane %v653_v25, 7 }
  0x7d   : > { %v422_v30 = vadd.f32 %v421_v18, %v420_v19  ;;  %v442_v36 = vadd.f32 %v441_v22, %v440_v27  ;;  %v432_v38 = vsel %vm262_vm0, %v431_v31, 0.0  ;;  %v434_v40 = vsel %vm263_vm1, %v433_v32, 0.0 }
  0x7e   : > { %v464_v34 = vadd.f32 %v463_v24, %v462_v29  ;;  %v447_v42 = vmul.f32 %v1095_v6, %v432_v38  ;;  %v449_v44 = vmul.f32 %v651_v20, %v1097_v7  ;;  %v467_v47 = vmul.f32 %v1091_v4, %v432_v38 }
  0x7f   : > { %v424_v39 = vadd.f32 %v423_v11, %v422_v30  ;;  %v444_v41 = vadd.f32 %v443_v33, %v442_v36  ;;  %v481_v48 = vmul.f32 %v1106_v16, %v432_v38  ;;  %v458_v50 = vsel %vm262_vm0, %v457_v37, 0.0 }
  0x80   : > { %v466_v43 = vadd.f32 %v465_v28, %v464_v34  ;;  %v459_v51 = vrot.slane %v653_v25, 1  ;;  %v471_v52 = vmul.f32 %v1093_v5, %v434_v40  ;;  %v469_v55 = vmul.f32 %v651_v20, %v1089_v3 }
  0x81   : > { %v426_v45 = vadd.f32 %v425_v21, %v424_v39  ;;  %v446_v49 = vadd.f32 %v445_v35, %v444_v41  ;;  %v451_v57 = vmul.f32 %v1099_v8, %v434_v40  ;;  %v482_v58 = vadd.f32 %v1124_v26, %v481_v48 }
  0x82   : > { %v468_v53 = vadd.f32 %v467_v47, %v466_v43  ;;  %v485_v16 = vmul.f32 %v1108_v17, %v434_v40  ;;  %v473_v59 = vmul.f32 %v1095_v6, %v458_v50  ;;  %v483_v60 = vmul.f32 %v651_v20, %v1087_v2 }
  0x83   : > { %650 = vst.msk [vmem:[%s1171_s24 + $0x20] sm:$0xff] %vm311_vm2, %v426_v45  ;;  %v448_v56 = vadd.f32 %v447_v42, %v446_v49  ;;  %v460_v62 = vsel %vm263_vm1, %v459_v51, 0.0  ;;  %v475_v0 = vmul.f32 %v653_v25, %v1097_v7  ;;  %v487_v26 = vmul.f32 %v1091_v4, %v458_v50 }
  0x84   : > { %v470_v46 = vadd.f32 %v469_v55, %v468_v53  ;;  %v484_v9 = vadd.f32 %v483_v60, %v482_v58  ;;  %v477_v10 = vmul.f32 %v1099_v8, %v460_v62  ;;  %v489_v2 = vmul.f32 %v653_v25, %v1089_v3 }
  0x85   : > { %v450_v61 = vadd.f32 %v449_v44, %v448_v56  ;;  %v491_v7 = vmul.f32 %v1093_v5, %v460_v62 }
  0x86   : > { %v472_v63 = vadd.f32 %v471_v52, %v470_v46  ;;  %v486_v6 = vadd.f32 %v485_v16, %v484_v9 }
  0x87   : > { %v452_v54 = vadd.f32 %v451_v57, %v450_v61 }
  0x88   : > { %v474_v17 = vadd.f32 %v473_v59, %v472_v63  ;;  %v488_v11 = vadd.f32 %v487_v26, %v486_v6 }
  0x89   : > { %652 = vst.msk [vmem:[%s1171_s24 + $0x28] sm:$0xff] %vm311_vm2, %v452_v54 }
  0x8a   : > { %v476_v1 = vadd.f32 %v475_v0, %v474_v17  ;;  %v490_v12 = vadd.f32 %v489_v2, %v488_v11 }
  0x8c   : > { %v478_v4 = vadd.f32 %v477_v10, %v476_v1  ;;  %v492_v3 = vadd.f32 %v491_v7, %v490_v12 }
  0x8e   : > { %654 = vst.msk [vmem:[%s1171_s24 + $0x30] sm:$0xff] %vm311_vm2, %v478_v4  ;;  %655 = vst.msk [vmem:[%s1171_s24 + $0x38] sm:$0xff] %vm311_vm2, %v492_v3 }
  0x8f   : > { %813 = shalt.err (!%p810_p5)
}
  0x90   : > { %s814_s25 = scalar_lea.hbm %s1249_s26, 1024  ;;  %s818_s6 = scalar_lea.hbm %s1305_s3, 2048 }
  0x91   : > { %p815_p9 = scmp.ne.s32.totalorder %s1249_s26, %s814_s25  ;;  %p819_p3 = scmp.lt.u32.totalorder %s1249_s26, %s1305_s3 }
  0x92   : > { %p820_p7 = scmp.lt.u32.totalorder %s818_s6, %s814_s25  ;;  %p822_p4 = scmp.lt.u32.totalorder %s814_s25, %s1249_s26 }
  0x93   : > { %p816_p1 = pnand %p815_p9, %p1013_p10 }
  0x94   : > { %p821_p13 = por %p820_p7, %p819_p3 }
  0x95   : > { %p817_p2 = pneg %p816_p1 }
  0x96   : > { %p823_p6 = por %p822_p4, %p821_p13 }
  0x98   : > { %p824_p8 = pnand %p823_p6, %p817_p2 }
  0x9a   : > { %827 = shalt.err (!%p824_p8)
}
  0x9b   : > { %s895_s24 = smov 128   ;;  %s896_s10 = smov 8  }
  0x9c   : > { %669 = dma.vmem_to_hbm [thread:$0]  (%p1013_p10), %s1244_s9, 1024, %s1249_s26, %s496_s7, %s895_s24, %s895_s24, %s896_s10  }
  0x9d PF: > { %s525_s11 = sand.u32 1, %s866_s12   ;;  %p1323_p12 = scmp.ne.s32.totalorder %s1313_s23, 0 }
  0x9e   : > { %p1324_p11 = scmp.ge.s32.totalorder %s886_s17, 2  ;;  %s526_s18 = scalar_lea.sflag [#allocation4], %s525_s11 }
  0xa0   : > { %p680_p0 = pnand %p1324_p11, %p1323_p12 }
  0xa2   : > { %861 = dma.done.wait (!%p680_p0), %s526_s18, 1024  }
  0xa3   : > { %863 = vsyncadd (!%p680_p0), %s526_s18, 4294966272  ;;  %s20_s17 = sadd.s32 1, %s886_s17   ;;  %s1325_s12 = smov %s870_s13 }
  0xa4   : > { %p17_p5 = scmp.ge.s32.totalorder %s20_s17, 4   ;;  %s1326_s13 = smov %s874_s14 }
  0xa5   : > { %s1327_s14 = smov %s1022_s5  ;;  %s1328_s15 = smov %s882_s16 }
  0xa6   : > { %s1329_s16 = smov %s1331_s28  ;;  %19 = sbr.rel (!%p17_p5) target bundleno = 7 (0x7), region = 101 }
  0xad   :  { %531 = vsyncpa [#allocation3], 1 }
  0xae   :  { %533 = vsyncpa [#allocation3 + $0x1], 1 }
  0xaf   :  { %534 = vsyncpa [#allocation6], 1 }
  0xb0   :  { %535 = vsyncpa [#allocation4], 1 }
  0xb1   :  { %537 = vsyncpa [#allocation4 + $0x1], 1 }

</bundles_post_ra>
